<compile_context>
chip_gen: v5e
topology: v5e:2x2
jax: 0.10.0
libtpu: 0.0.40
codegen_flags: <defaults>
</compile_context>

<pallas_src>
import functools

import jax
import jax.numpy as jnp
from jax.experimental import pallas as pl
from jax.experimental.pallas import tpu as pltpu

_XAS_LENGTH = {"XANES": 100, "EXAFS": 500, "XAFS": 600}
_OUT_DIM = 118            # number of elements (fixed by the module)
_OUT_DIM_PAD = 128        # lane-padded output width
_BN_EPS = 1e-5
_MAX_TILE_M = 1024        # batch tile cap; activation tile dominates VMEM and fits easily


def _round_up(x, m):
    return (x + m - 1) // m * m


def _choose_tiling(n):
    """Adaptive batch tiling.

    * rows rounded to 16 (bf16 packs two rows per sublane),
    * padding capped at < 2*16 rows instead of rounding N to a tile multiple,
    * >= 2 parallel grid steps when there is enough work (v7x: 2 TensorCores).
    """
    n16 = _round_up(max(n, 1), 16)
    tiles = pl.cdiv(n16, _MAX_TILE_M)
    if n16 >= 32:                       # enough rows to split across 2 TCs
        tiles = max(tiles, 2)
    tile_m = _round_up(pl.cdiv(n16, tiles), 16)
    num_tiles = pl.cdiv(n16, tile_m)    # num_tiles * tile_m >= n always
    return tile_m, num_tiles


# ------------------------------ Pallas kernel ------------------------------- #
def _mlp_kernel(num_layers, x_ref, *refs):
    """Fused MLP: (Linear -> ReLU) x (num_layers-1) -> Linear.

    refs = (w0, b0, w1, b1, ..., w_{L-1}, b_{L-1}, out).
    x is f32 (cast to bf16 here), weights bf16 (BN folded in), biases f32,
    accumulation f32, output bf16.  Dropout (eval mode) is the identity.
    """
    o_ref = refs[-1]
    h = x_ref[...].astype(jnp.bfloat16)              # cast inside the kernel
    for i in range(num_layers):
        w = refs[2 * i][...]                          # (d_in[_p], d_out_p) bf16
        b = refs[2 * i + 1][...]                      # (1, d_out_p)        f32
        y = jnp.dot(h, w, preferred_element_type=jnp.float32) + b
        if i + 1 < num_layers:
            h = jnp.maximum(y, 0.0).astype(jnp.bfloat16)   # ReLU, bf16 for MXU
        else:
            o_ref[...] = y.astype(o_ref.dtype)             # bf16 store


# ------------------------------- model setup -------------------------------- #
def init_xas_atom_params(key, xas_type="XANES", hidden_dims=()):
    """Raw parameters mirroring the PyTorch module's layer shapes (f32)."""
    dims = [_XAS_LENGTH[xas_type]] + list(hidden_dims) + [_OUT_DIM]
    params = []
    for i, (d_in, d_out) in enumerate(zip(dims[:-1], dims[1:])):
        key, kw, kb = jax.random.split(key, 3)
        bound = 1.0 / jnp.sqrt(jnp.float32(d_in))    # nn.Linear default init range
        w = jax.random.uniform(kw, (d_in, d_out), jnp.float32, -bound, bound)
        b = jax.random.uniform(kb, (1, d_out), jnp.float32, -bound, bound)
        layer = {"w": w, "b": b}
        if i < len(dims) - 2:                        # hidden layer -> BatchNorm1d
            layer["gamma"] = jnp.ones((1, d_out), jnp.float32)
            layer["beta"] = jnp.zeros((1, d_out), jnp.float32)
            layer["mean"] = jnp.zeros((1, d_out), jnp.float32)
            layer["var"] = jnp.ones((1, d_out), jnp.float32)
        params.append(layer)
    return params


def prepare_params(params):
    """One-time prep: fold inference BN into W/b, pad feature dims, cast W to bf16.

    Layer 0 keeps its raw input dim (matches the un-padded activations fed to
    the kernel); every output dim (and thus every later layer's input dim) is
    zero-padded to a multiple of 128 lanes so intermediate activations and the
    output stay lane-dense.
    """
    prepared = []
    for i, layer in enumerate(params):
        w = layer["w"]
        b = layer["b"]
        if "gamma" in layer:                         # fold BN (running stats) into Linear
            scale = layer["gamma"] * jax.lax.rsqrt(layer["var"] + _BN_EPS)   # (1, d_out)
            w = w * scale
            b = (b - layer["mean"]) * scale + layer["beta"]
        d_in, d_out = w.shape
        d_in_p = d_in if i == 0 else _round_up(d_in, 128)
        d_out_p = _round_up(d_out, 128)
        w_p = jnp.zeros((d_in_p, d_out_p), jnp.float32).at[:d_in, :d_out].set(w)
        b_p = jnp.zeros((1, d_out_p), jnp.float32).at[:, :d_out].set(b)
        prepared.append({"w": w_p.astype(jnp.bfloat16), "b": b_p})
    return prepared


# --------------------------------- forward ---------------------------------- #
def _forward_padded_impl(x, prepared):
    """x: (N, L) float32 -> (N, 128) bfloat16 (lanes 118..127 are zero-padding)."""
    n, d_in = x.shape
    num_layers = len(prepared)
    assert prepared[0]["w"].shape[0] == d_in, "input dim mismatch with prepared params"
    d_out_p = prepared[-1]["w"].shape[1]

    tile_m, num_tiles = _choose_tiling(n)

    # Activation: full last dim (== L, satisfies the (8,128)-or-full-dim rule),
    # batch tiled; partial edge blocks are masked by Pallas, so no padding pass.
    in_specs = [pl.BlockSpec((tile_m, d_in), lambda i: (i, 0))]
    args = [x]
    for layer in prepared:
        w, b = layer["w"], layer["b"]
        # Weights/biases: full-array blocks, index_map pinned to (0, 0) so they
        # stay VMEM-resident across all batch-grid steps.
        in_specs.append(pl.BlockSpec(w.shape, lambda i: (0, 0)))
        in_specs.append(pl.BlockSpec(b.shape, lambda i: (0, 0)))
        args.extend([w, b])

    return pl.pallas_call(
        functools.partial(_mlp_kernel, num_layers),
        out_shape=jax.ShapeDtypeStruct((n, d_out_p), jnp.bfloat16),
        grid=(num_tiles,),
        in_specs=in_specs,
        out_specs=pl.BlockSpec((tile_m, d_out_p), lambda i: (i, 0)),
        compiler_params=pltpu.CompilerParams(
            dimension_semantics=("parallel",)),   # v7x: shard batch over both TCs
    )(*args)


xas_atom_forward_padded = jax.jit(_forward_padded_impl)


def xas_atom_forward(x, prepared):
    """Convenience wrapper matching the PyTorch module's (N, 118) output.

    In production, fuse the 118-lane selection into the downstream consumer
    instead of materializing this strided slice.
    """
    return xas_atom_forward_padded(x, prepared)[:, :_OUT_DIM]


# --------------------------- pure-JAX f32 reference -------------------------- #
def xas_atom_ref(x, params):
    h = x
    for layer in params:
        h = h @ layer["w"] + layer["b"]
        if "gamma" in layer:
            h = (h - layer["mean"]) / jnp.sqrt(layer["var"] + _BN_EPS)
            h = h * layer["gamma"] + layer["beta"]
            h = jnp.maximum(h, 0.0)
    return h


if __name__ == "__main__":
    key = jax.random.PRNGKey(0)
    k_in, k_in2, k_param, k_param2 = jax.random.split(key, 4)

    # bf16 matmul inputs + bf16 output vs the f32 reference -> bf16 tolerance.
    TOL = dict(atol=2.5e-2, rtol=2.5e-2)

    # ---- default config: XANES (L=100), hidden_dims=[] -> single Linear(100,118)
    N, L = 8, _XAS_LENGTH["XANES"]
    x = jax.random.normal(k_in, (N, L), jnp.float32)
    params_default = init_xas_atom_params(k_param, "XANES", hidden_dims=())
    prep_default = prepare_params(params_default)
    out_pad = jax.block_until_ready(xas_atom_forward_padded(x, prep_default))
    assert out_pad.shape == (N, _OUT_DIM_PAD)
    out_default = out_pad[:, :_OUT_DIM].astype(jnp.float32)
    assert out_default.shape == (N, _OUT_DIM)
    assert jnp.allclose(out_default, xas_atom_ref(x, params_default), **TOL)

    # ---- hidden-layer config: Linear -> BN -> ReLU (-> Dropout=id) -> Linear
    params_hidden = init_xas_atom_params(k_param2, "XANES", hidden_dims=(32,))
    prep_hidden = prepare_params(params_hidden)
    out_hidden = jax.block_until_ready(xas_atom_forward(x, prep_hidden))
    assert out_hidden.shape == (N, _OUT_DIM)
    assert jnp.allclose(out_hidden.astype(jnp.float32),
                        xas_atom_ref(x, params_hidden), **TOL)

    # ---- larger batch: adaptive tiling -> 2 parallel grid steps (tile_m=272),
    #      partial edge block exercises Pallas boundary masking (no row padding).
    N2 = 520
    x2 = jax.random.normal(k_in2, (N2, L), jnp.float32)
    out_big = jax.block_until_ready(xas_atom_forward(x2, prep_hidden))
    assert out_big.shape == (N2, _OUT_DIM)
    assert jnp.allclose(out_big.astype(jnp.float32),
                        xas_atom_ref(x2, params_hidden), **TOL)

    # TODO(synk): dropout with rate>0 in training mode (RNG mask) and
    # batch-statistics BatchNorm are not modeled; this is the inference forward.
    print("KERNEL_OK")
</pallas_src>

<mosaic_0001>
module attributes {stable_mosaic.version = 11 : i64} {
  func.func @_mlp_kernel(%arg0: i32, %arg1: memref<16x100xf32, #tpu.memory_space<vmem>>, %arg2: memref<100x128xbf16, #tpu.memory_space<vmem>>, %arg3: memref<1x128xf32, #tpu.memory_space<vmem>>, %arg4: memref<16x128xbf16, #tpu.memory_space<vmem>>) attributes {dimension_semantics = [#tpu.dimension_semantics<parallel>], iteration_bounds = array<i64: 1>, scalar_prefetch = 0 : i64, scratch_operands = 0 : i64, tpu.core_type = #tpu.core_type<tc>, window_params = [{transform_indices = @transform_0, window_bounds = array<i64: 16, 100>}, {pipeline_mode = #tpu.pipeline_mode<synchronous>, transform_indices = @transform_1, window_bounds = array<i64: 100, 128>}, {pipeline_mode = #tpu.pipeline_mode<synchronous>, transform_indices = @transform_2, window_bounds = array<i64: 1, 128>}, {transform_indices = @transform_3, window_bounds = array<i64: 16, 128>}]} {
    %c0 = arith.constant 0 : index
    %c0_0 = arith.constant 0 : index
    %0 = vector.load %arg1[%c0, %c0_0] : memref<16x100xf32, #tpu.memory_space<vmem>>, vector<16x100xf32>
    %1 = arith.truncf %0 : vector<16x100xf32> to vector<16x100xbf16>
    %c0_1 = arith.constant 0 : index
    %c0_2 = arith.constant 0 : index
    %2 = vector.load %arg2[%c0_1, %c0_2] : memref<100x128xbf16, #tpu.memory_space<vmem>>, vector<100x128xbf16>
    %c0_3 = arith.constant 0 : index
    %c0_4 = arith.constant 0 : index
    %3 = vector.load %arg3[%c0_3, %c0_4] : memref<1x128xf32, #tpu.memory_space<vmem>>, vector<1x128xf32>
    %cst = arith.constant dense<0.000000e+00> : vector<16x128xf32>
    %4 = tpu.matmul %1, %2, %cst {dimension_numbers = #tpu.dot_dimension_numbers<[1], [0], [0], [1], [0, 0, 1, 1], [], []>} : vector<16x100xbf16>, vector<100x128xbf16>, vector<16x128xf32> -> vector<16x128xf32>
    %5 = vector.broadcast %3 : vector<1x128xf32> to vector<16x128xf32>
    %6 = arith.addf %4, %5 : vector<16x128xf32>
    %7 = arith.truncf %6 : vector<16x128xf32> to vector<16x128xbf16>
    %c0_5 = arith.constant 0 : index
    %c0_6 = arith.constant 0 : index
    %8 = vector.load %arg4[%c0_5, %c0_6] : memref<16x128xbf16, #tpu.memory_space<vmem>>, vector<16x128xbf16>
    tpu.vector_store %arg4[%c0_5, %c0_6], %7 {strides = array<i32>} : memref<16x128xbf16, #tpu.memory_space<vmem>>, vector<16x128xbf16>,
    return
  }
  func.func @transform_0(%arg0: i32) -> (i32, i32) {
    %c0_i32 = arith.constant 0 : i32
    %c0_i32_0 = arith.constant 0 : i32
    return %arg0, %c0_i32 : i32, i32
  }
  func.func @transform_1(%arg0: i32) -> (i32, i32) {
    %c0_i32 = arith.constant 0 : i32
    %c0_i32_0 = arith.constant 0 : i32
    %c0_i32_1 = arith.constant 0 : i32
    return %c0_i32, %c0_i32_0 : i32, i32
  }
  func.func @transform_2(%arg0: i32) -> (i32, i32) {
    %c0_i32 = arith.constant 0 : i32
    %c0_i32_0 = arith.constant 0 : i32
    %c0_i32_1 = arith.constant 0 : i32
    return %c0_i32, %c0_i32_0 : i32, i32
  }
  func.func @transform_3(%arg0: i32) -> (i32, i32) {
    %c0_i32 = arith.constant 0 : i32
    %c0_i32_0 = arith.constant 0 : i32
    return %arg0, %c0_i32 : i32, i32
  }
}

</mosaic_0001>

<bundles_post_ra>
// kernel: _forward_padded_impl.1
= control target key start
LH: loop header
LB: loop body
LE: loop exit
PB: predicated region body
PF: predicated region fallthrough
CT: control target
= control target key end

     0   :  { %8 = vsyncpa [#allocation3], 0  ;;  %s359_s0 = inlined_call_operand.hbm [shape: f32[8,100], index: 0, kind: input, shape index: {}]   ;;  %s360_s1 = inlined_call_operand.hbm [shape: bf16[100,128], index: 1, kind: input, shape index: {}]   ;;  %s361_s2 = inlined_call_operand.hbm [shape: f32[1,128], index: 2, kind: input, shape index: {}]   ;;  %s362_s3 = inlined_call_operand.hbm [shape: bf16[8,128], index: 3, kind: output, shape index: {}]  }
   0x1   :  { %9 = vsyncpa [#allocation6], 0 }
   0x2   :  { %10 = vsyncpa [#allocation4], 0  ;;  %s28_s14 = sshll.u32 %s360_s1, 4  ;;  %s29_s14 = int_to_ptr.hbm [resolvable:$true] %s28_s14 }
   0x3   :  { %14 = vsyncadd [#allocation3], 128  ;;  %s313_s15 = smov [#allocation5]   ;;  %s15_s19 = sshll.u32 %s359_s0, 4  ;;  %s16_s19 = int_to_ptr.hbm [resolvable:$true] %s15_s19 }
   0x4   :  { %s30_s16 = sshll.u32 %s313_s15, 4  ;;  %s314_s20 = smov 64   ;;  %s31_s16 = int_to_ptr.vmem [resolvable:$true] %s30_s16 }
   0x5   :  { %s315_s21 = smov 4   ;;  %s316_s22 = smov [#allocation2]  }
   0x6   :  { %36 = dma.hbm_to_vmem [thread:$0]  %s29_s14, 832, %s31_s16, [#allocation6], %s314_s20, %s314_s20, %s315_s21  }
   0x7   :  { %s17_s23 = sshll.u32 %s316_s22, 4  ;;  %s317_s1 = smov 128   ;;  %s18_s23 = int_to_ptr.vmem [resolvable:$true] %s17_s23 }
   0x8   :  { %s318_s24 = smov 8   ;;  %s42_s27 = sshll.u32 %s361_s2, 4  ;;  %s43_s27 = int_to_ptr.hbm [resolvable:$true] %s42_s27 }
   0x9   :  { %23 = dma.hbm_to_vmem [thread:$0]  %s16_s19, 128, %s18_s23, [#allocation3], %s317_s1, %s317_s1, %s318_s24  }
   0xa   :  { %s319_s28 = smov [#allocation7]  }
   0xb   :  { %s44_s0 = sshll.u32 %s319_s28, 4  ;;  %s45_s0 = int_to_ptr.vmem [resolvable:$true] %s44_s0 }
   0xc   :  { %47 = dma.hbm_to_vmem [thread:$0]  %s43_s27, 16, %s45_s0, [#allocation6]  }
   0xd   :  { %307 = dma.done.wait [#allocation3], 256  }
   0xe   :  { %308 = vsyncadd [#allocation3], 4294967040 }
   0xf   :  { %309 = dma.done.wait [#allocation6], 848  }
  0x10   :  { %310 = vsyncadd [#allocation6], 4294966448  ;;  %v76_v0 = vld [vmem:[#allocation5 + $0x30] sm:$0x3]  ;;  %vm124_vm0 = vcmask 1041408   ;;  %v196_v4 = vld [vmem:[#allocation5 + $0x28] sm:$0xff] }
  0x11   :  { %v106_v1 = vunpack.c.l.b16 %v76_v0  ;;  %v195_v5 = vld [vmem:[#allocation5 + $0x20] sm:$0xff]  ;;  %v194_v6 = vld [vmem:[#allocation5 + $0x18] sm:$0xff]  ;;  %v193_v7 = vld [vmem:[#allocation5 + $0x10] sm:$0xff]  ;;  %vm120_vm1 = vcmask 818176  }
  0x12   :  { %v192_v8 = vld [vmem:[#allocation5 + $0x8] sm:$0xff]  ;;  %v191_v9 = vld [vmem:[#allocation5] sm:$0xff]  ;;  %v61_v10 = vld [vmem:[#allocation2] sm:$0xff] }
  0x13   :  { %v113_v2 = vpack.c.b16 %v106_v1, %v106_v1  ;;  %v62_v11 = vld [vmem:[#allocation2 + $0x8] sm:$0xff]  ;;  %v210_v14 = vld [vmem:[#allocation7] ss:$0 sm:$0xff] }
  0x14   :  { %v63_v12 = vpack.c.bf16 %v62_v11, %v61_v10 }
  0x15   :  { %v126_v3 = vsel %vm124_vm0, %v113_v2, 0 }
  0x16   :  { %129 = vmatpush.bf16.msra.mxu0 %v126_v3 }
  0x1a   :  { %130 = vmatpush.bf16.msra.mxu0 %v196_v4 }
  0x1e   :  { %131 = vmatpush.bf16.msra.mxu0 %v195_v5 }
  0x22   :  { %132 = vmatpush.bf16.msra.mxu0 %v194_v6 }
  0x26   :  { %133 = vmatpush.bf16.msra.mxu0 %v193_v7 }
  0x2a   :  { %134 = vmatpush.bf16.msra.mxu0 %v192_v8 }
  0x2e   :  { %135 = vmatpush.bf16.msra.mxu0 %v191_v9 }
  0x31   :  { %190 = vmatmul.msk.bf16.vlgmr.msra.gmra.mxu0 %vm120_vm1, %v63_v12 }
  0xae   :  { %v137_v13 = vpop.f32.mrf.mxu0 }
  0xaf   :  { %v138_v16 = vadd.f32 %v210_v14, %v137_v13 }
  0xb6   :  { %v139_v15 = vpop.f32.mrf.mxu0 }
  0xb7   :  { %v140_v17 = vadd.f32 %v210_v14, %v139_v15 }
  0xb9   :  { %v200_v18 = vpack.c.bf16 %v140_v17, %v138_v16 }
  0xbb   :  { %201 = vst [vmem:[#allocation8] sm:$0xff] %v200_v18  }
  0xbc   :  { %149 = vsyncadd [#allocation4], 64  ;;  %s152_s30 = sshll.u32 %s362_s3, 4  ;;  %s320_s4 = smov [#allocation8]   ;;  %s153_s30 = int_to_ptr.hbm [resolvable:$true] %s152_s30 }
  0xbd   :  { %s150_s5 = sshll.u32 %s320_s4, 4  ;;  %s151_s5 = int_to_ptr.vmem [resolvable:$true] %s150_s5 }
  0xbe   :  { %158 = dma.vmem_to_hbm [thread:$0]  %s151_s5, 64, %s153_s30, [#allocation4], %s314_s20, %s314_s20, %s315_s21  }
  0xbf   :  { %311 = dma.done.wait [#allocation4], 128  }
  0xc0   :  { %312 = vsyncadd [#allocation4], 4294967168 }
  0xc1   :  { %163 = vsyncpa [#allocation3], 1 }
  0xc2   :  { %164 = vsyncpa [#allocation6], 1 }
  0xc3   :  { %165 = vsyncpa [#allocation4], 1 }

</bundles_post_ra>
